<compile_context>
chip_gen: v6e
topology: v6e:2x2x1
jax: 0.10.0
libtpu: 0.0.40
codegen_flags: <defaults>
</compile_context>

<pallas_src>
import jax
import jax.numpy as jnp
import numpy as np
from jax.experimental import pallas as pl
from jax.experimental.pallas import tpu as pltpu  # noqa: F401  (not needed for this no-grid kernel)

# Problem sizes implied by the module: Linear(32, 10) with 2 encoder channels
# => H = W = 4.  Small batch for the test.
N, CIN, H, W = 2, 3, 4, 4
HW = H * W                      # 16
CENC = 2                        # encoder out channels
CDEC = 3                        # decoder out channels
NCLS = 10                       # classifier out features

IN_FLAT = CIN * HW              # 48  (x flattened per sample, NCHW order)
ENC_FLAT = CENC * HW            # 32  (classifier in-features)
DEC_FLAT = CDEC * HW            # 48

OUT_W = 256                     # lane-dense output slab width (2 x 128)
CLS_COL = 128                   # logits live at cols [128, 128+NCLS)

# Parameter-slab row layout (8-aligned section starts).
ROW_A_ENC = 0                   # rows [0, 48)   cols [0, 32)    : A_enc
ROW_A_OUT = IN_FLAT             # rows [48, 80)  cols [0, 256)   : A_out = [A_dec | 0 | Wc^T | 0]
ROW_B_ENC = 80                  # row 80         cols [0, 32)    : encoder bias (repeated per pixel)
ROW_B_OUT = 88                  # row 88         cols [0, 256)   : [dec bias | 0 | cls bias | 0]
SLAB_ROWS = 96


def mock_model_kernel(x_ref, p_ref, out_ref):
    # x_ref:   (N, 48)   whole-batch input, NCHW-flattened per sample
    # p_ref:   (96, 256) packed parameter slab (single DMA)
    # out_ref: (N, 256)  lane-dense output slab: [decoded(48) | pad | logits(10) | pad]
    x = x_ref[...]                                              # (N, 48)

    a_enc = p_ref[ROW_A_ENC:ROW_A_ENC + IN_FLAT, 0:ENC_FLAT]    # (48, 32)
    b_enc = p_ref[ROW_B_ENC:ROW_B_ENC + 1, 0:ENC_FLAT]          # (1, 32)
    a_out = p_ref[ROW_A_OUT:ROW_A_OUT + ENC_FLAT, :]            # (32, 256)
    b_out = p_ref[ROW_B_OUT:ROW_B_OUT + 1, :]                   # (1, 256)

    # encoder (1x1 conv) as one MXU matmul over the whole batch
    enc = jnp.dot(x, a_enc, preferred_element_type=jnp.float32) + b_enc     # (N, 32)

    # decoder (1x1 conv) + classifier fused into one matmul; result is already
    # the lane-dense output slab -> single unmasked store.
    out_ref[...] = (jnp.dot(enc, a_out, preferred_element_type=jnp.float32)
                    + b_out)                                                # (N, 256)


def _pack_params(we, be, wd, bd, wc, bc):
    """Pack all parameters (expanded to per-pixel block-diagonal form) into one slab."""
    f32 = jnp.float32
    eye = jnp.eye(HW, dtype=f32)
    # kron(W, I_HW)[o*HW + p, i*HW + p'] = W[o, i] * delta(p, p'); transpose so the
    # matmul contracts over the input flatten index (ci*HW + p).
    a_enc = jnp.kron(we.astype(f32), eye).T          # (48, 32)
    a_dec = jnp.kron(wd.astype(f32), eye).T          # (32, 48)

    slab = jnp.zeros((SLAB_ROWS, OUT_W), f32)
    slab = slab.at[ROW_A_ENC:ROW_A_ENC + IN_FLAT, 0:ENC_FLAT].set(a_enc)
    slab = slab.at[ROW_A_OUT:ROW_A_OUT + ENC_FLAT, 0:DEC_FLAT].set(a_dec)
    slab = slab.at[ROW_A_OUT:ROW_A_OUT + ENC_FLAT, CLS_COL:CLS_COL + NCLS].set(wc.astype(f32).T)
    slab = slab.at[ROW_B_ENC, 0:ENC_FLAT].set(jnp.repeat(be.astype(f32), HW))
    slab = slab.at[ROW_B_OUT, 0:DEC_FLAT].set(jnp.repeat(bd.astype(f32), HW))
    slab = slab.at[ROW_B_OUT, CLS_COL:CLS_COL + NCLS].set(bc.astype(f32))
    return slab


def mock_model_forward(x_nchw, we, be, wd, bd, wc, bc):
    """x_nchw: (N, 3, 4, 4) f32. Returns (decoded (N,3,4,4), classified (N,10))."""
    n = x_nchw.shape[0]
    # PyTorch flatten(1) order: index = c*HW + h*W + w
    x_flat = x_nchw.astype(jnp.float32).reshape(n, IN_FLAT)     # (N, 48)
    slab = _pack_params(we, be, wd, bd, wc, bc)                 # (96, 256)

    # Single invocation, no grid: whole arrays live in VMEM (few hundred KiB),
    # 2 input DMAs + 1 output DMA total.
    out = pl.pallas_call(
        mock_model_kernel,
        out_shape=jax.ShapeDtypeStruct((n, OUT_W), jnp.float32),
    )(x_flat, slab)

    decoded = out[:, 0:DEC_FLAT].reshape(n, CDEC, H, W)
    classified = out[:, CLS_COL:CLS_COL + NCLS]
    return decoded, classified


def reference_forward(x_nchw, we, be, wd, bd, wc, bc):
    enc = jnp.einsum('oc,nchw->nohw', we, x_nchw) + be[None, :, None, None]
    dec = jnp.einsum('oc,nchw->nohw', wd, enc) + bd[None, :, None, None]
    cls = enc.reshape(enc.shape[0], -1) @ wc.T + bc[None, :]
    return dec, cls


if __name__ == "__main__":
    key = jax.random.PRNGKey(0)
    kx, k1, k2, k3, k4, k5, k6 = jax.random.split(key, 7)

    # deterministic synthetic parameters (shapes match the PyTorch module)
    x = jax.random.normal(kx, (N, CIN, H, W), dtype=jnp.float32)
    we = jax.random.normal(k1, (CENC, CIN), dtype=jnp.float32) * 0.1   # Conv2d(3,2,1).weight[:, :, 0, 0]
    be = jax.random.normal(k2, (CENC,), dtype=jnp.float32) * 0.1
    wd = jax.random.normal(k3, (CDEC, CENC), dtype=jnp.float32) * 0.1  # Conv2d(2,3,1).weight[:, :, 0, 0]
    bd = jax.random.normal(k4, (CDEC,), dtype=jnp.float32) * 0.1
    wc = jax.random.normal(k5, (NCLS, ENC_FLAT), dtype=jnp.float32) * 0.1  # Linear(32,10).weight
    bc = jax.random.normal(k6, (NCLS,), dtype=jnp.float32) * 0.1

    dec, cls = mock_model_forward(x, we, be, wd, bd, wc, bc)
    jax.block_until_ready((dec, cls))

    dec_ref, cls_ref = reference_forward(x, we, be, wd, bd, wc, bc)
    np.testing.assert_allclose(np.asarray(dec), np.asarray(dec_ref), rtol=1e-5, atol=1e-5)
    np.testing.assert_allclose(np.asarray(cls), np.asarray(cls_ref), rtol=1e-5, atol=1e-5)

    print("KERNEL_OK")
</pallas_src>

<mosaic_0001>
module attributes {stable_mosaic.version = 11 : i64} {
  func.func @mock_model_kernel(%arg0: memref<2x48xf32, #tpu.memory_space<vmem>>, %arg1: memref<96x256xf32, #tpu.memory_space<vmem>>, %arg2: memref<2x256xf32, #tpu.memory_space<vmem>>) attributes {dimension_semantics = [], scalar_prefetch = 0 : i64, scratch_operands = 0 : i64, tpu.core_type = #tpu.core_type<tc>} {
    %c0 = arith.constant 0 : index
    %c0_0 = arith.constant 0 : index
    %0 = vector.load %arg0[%c0, %c0_0] : memref<2x48xf32, #tpu.memory_space<vmem>>, vector<2x48xf32>
    %c0_1 = arith.constant 0 : index
    %c0_2 = arith.constant 0 : index
    %1 = vector.load %arg1[%c0_1, %c0_2] : memref<96x256xf32, #tpu.memory_space<vmem>>, vector<48x32xf32>
    %c80 = arith.constant 80 : index
    %c0_3 = arith.constant 0 : index
    %2 = vector.load %arg1[%c80, %c0_3] : memref<96x256xf32, #tpu.memory_space<vmem>>, vector<1x32xf32>
    %c48 = arith.constant 48 : index
    %c0_4 = arith.constant 0 : index
    %3 = vector.load %arg1[%c48, %c0_4] : memref<96x256xf32, #tpu.memory_space<vmem>>, vector<32x256xf32>
    %c88 = arith.constant 88 : index
    %c0_5 = arith.constant 0 : index
    %4 = vector.load %arg1[%c88, %c0_5] : memref<96x256xf32, #tpu.memory_space<vmem>>, vector<1x256xf32>
    %cst = arith.constant dense<0.000000e+00> : vector<2x32xf32>
    %5 = tpu.matmul %0, %1, %cst {dimension_numbers = #tpu.dot_dimension_numbers<[1], [0], [0], [1], [0, 0, 1, 1], [], []>} : vector<2x48xf32>, vector<48x32xf32>, vector<2x32xf32> -> vector<2x32xf32>
    %6 = vector.broadcast %2 : vector<1x32xf32> to vector<2x32xf32>
    %7 = arith.addf %5, %6 : vector<2x32xf32>
    %cst_6 = arith.constant dense<0.000000e+00> : vector<2x256xf32>
    %8 = tpu.matmul %7, %3, %cst_6 {dimension_numbers = #tpu.dot_dimension_numbers<[1], [0], [0], [1], [0, 0, 1, 1], [], []>} : vector<2x32xf32>, vector<32x256xf32>, vector<2x256xf32> -> vector<2x256xf32>
    %9 = vector.broadcast %4 : vector<1x256xf32> to vector<2x256xf32>
    %10 = arith.addf %8, %9 : vector<2x256xf32>
    %c0_7 = arith.constant 0 : index
    %c0_8 = arith.constant 0 : index
    %11 = vector.load %arg2[%c0_7, %c0_8] : memref<2x256xf32, #tpu.memory_space<vmem>>, vector<2x256xf32>
    tpu.vector_store %arg2[%c0_7, %c0_8], %10 {strides = array<i32>} : memref<2x256xf32, #tpu.memory_space<vmem>>, vector<2x256xf32>,
    return
  }
}

</mosaic_0001>

<bundles_post_ra>
// kernel: tpu_custom_call.1
= control target key start
LH: loop header
LB: loop body
LE: loop exit
PB: predicated region body
PF: predicated region fallthrough
CT: control target
= control target key end

     0   :  { %7 = vsyncpa [#allocation3], 0  ;;  %s373_s0 = inlined_call_operand.hbm [shape: f32[2,48], index: 0, kind: input, shape index: {}]   ;;  %s374_s1 = inlined_call_operand.hbm [shape: f32[96,256], index: 1, kind: input, shape index: {}]   ;;  %s375_s2 = inlined_call_operand.hbm [shape: f32[2,256], index: 2, kind: output, shape index: {}]  }
   0x1   :  { %8 = vsyncpa [#allocation6], 0 }
   0x2   :  { %9 = vsyncpa [#allocation4], 0  ;;  %s342_s9 = smov [#allocation2]   ;;  %s343_s11 = smov [#allocation5]  }
   0x3   :  { %s16_s10 = sshll.u32 %s342_s9, 4  ;;  %s25_s12 = sshll.u32 %s343_s11, 4  ;;  %s17_s10 = int_to_ptr.vmem [resolvable:$true] %s16_s10  ;;  %s26_s12 = int_to_ptr.vmem [resolvable:$true] %s25_s12 }
   0x4   :  { %s284_s13 = scalar_lea.vmem %s17_s10, 32  ;;  %p289_p1 = scmp.lt.s32.totalorder %s17_s10, %s17_s10 }
   0x5   :  { %p285_p0 = scmp.ne.s32.totalorder %s17_s10, %s284_s13  ;;  %p290_p2 = scmp.lt.s32.totalorder %s284_s13, %s284_s13 }
   0x7   :  { %p291_p3 = por %p290_p2, %p289_p1 }
   0x9   :  { %p292_p4 = pnand %p291_p3, %p285_p0 }
   0xb   :  { %295 = shalt.err (!%p292_p4)
}
   0xc   :  { %19 = dma.hbm_to_vmem [thread:$0]  %s373_s0, 32, %s17_s10, [#allocation3]  }
   0xd   :  { %s304_s16 = scalar_lea.vmem %s26_s12, 3072  ;;  %p309_p6 = scmp.lt.s32.totalorder %s26_s12, %s26_s12 }
   0xe   :  { %p305_p5 = scmp.ne.s32.totalorder %s26_s12, %s304_s16  ;;  %p310_p7 = scmp.lt.s32.totalorder %s304_s16, %s304_s16 }
  0x10   :  { %p311_p8 = por %p310_p7, %p309_p6 }
  0x12   :  { %p312_p9 = pnand %p311_p8, %p305_p5 }
  0x14   :  { %315 = shalt.err (!%p312_p9)
}
  0x15   :  { %s344_s17 = smov 256   ;;  %s345_s18 = smov 16  }
  0x16   :  { %31 = dma.hbm_to_vmem [thread:$0]  %s374_s1, 3072, %s26_s12, [#allocation6], %s344_s17, %s344_s17, %s345_s18  }
  0x17   :  { %336 = dma.done.wait [#allocation3], 32  }
  0x18   :  { %337 = vsyncadd [#allocation3], 4294967264 }
  0x19   :  { %338 = dma.done.wait [#allocation6], 3072  }
  0x1a   :  { %339 = vsyncadd [#allocation6], 4294964224  ;;  %v346_v0 = vmov 0.0   ;;  %vm347_vm0 = vmmov 0   ;;  %v44_v1 = vld [vmem:[#allocation5 + $0x50] sm:$0xff]  ;;  %v43_v2 = vld [vmem:[#allocation5 + $0x40] sm:$0xff]  ;;  %v131_v20 = vlaneseq }
  0x1b   :  { %254 = vmatprep.subr.mxu0 %v346_v0  ;;  %266 = vmatprep.mubr.msk.f32.mxu0 %vm347_vm0, %v346_v0  ;;  %v42_v3 = vld [vmem:[#allocation5 + $0x30] sm:$0xff]  ;;  %v53_v4 = vld [vmem:[#allocation5 + $0x98] sm:$0xff]  ;;  %v51_v6 = vld [vmem:[#allocation5 + $0x88] sm:$0xff]  ;;  %vm56_vm1 = vcmask 392192   ;;  %vm141_vm2 = vcmask 261120   ;;  %s348_s0 = smov [#allocation7]  }
  0x1c   :  { %209 = vmatprep.mubr.f32.mxu1 %v346_v0  ;;  %255 = vmatpush3.msra.mxu0 %v44_v1  ;;  %v52_v5 = vld [vmem:[#allocation5 + $0x90] sm:$0xff]  ;;  %v50_v7 = vld [vmem:[#allocation5 + $0x80] sm:$0xff]  ;;  %v49_v9 = vld [vmem:[#allocation5 + $0x78] sm:$0xff]  ;;  %v132_v21 = vshrl.u32 %v131_v20, 7  ;;  %s234_s1 = sshll.u32 %s348_s0, 4  ;;  %s235_s1 = int_to_ptr.vmem [resolvable:$true] %s234_s1 }
  0x1d   :  { %256 = vmatprep.subr.mxu0 %v346_v0  ;;  %169 = vmatprep.subr.mxu1 %v53_v4  ;;  %v41_v8 = vld [vmem:[#allocation5 + $0x20] sm:$0xff]  ;;  %v40_v10 = vld [vmem:[#allocation5 + $0x10] sm:$0xff]  ;;  %v38_v12 = vld [vmem:[#allocation2] sm:$0x3]  ;;  %s316_s21 = scalar_lea.vmem %s235_s1, 64  ;;  %p321_p11 = scmp.lt.s32.totalorder %s235_s1, %s235_s1 }
  0x1e   :  { %257 = vmatpush3.msra.mxu0 %v43_v2  ;;  %170 = vmatpush1.msra.mxu1 %v52_v5  ;;  %v39_v11 = vld [vmem:[#allocation5] sm:$0xff]  ;;  %v48_v13 = vld [vmem:[#allocation5 + $0x70] sm:$0xff]  ;;  %v47_v14 = vld [vmem:[#allocation5 + $0x68] sm:$0xff]  ;;  %v133_v22 = vsub.s32 0, %v132_v21  ;;  %v137_v23 = vsub.s32 1, %v132_v21  ;;  %p317_p10 = scmp.ne.s32.totalorder %s235_s1, %s316_s21  ;;  %p322_p12 = scmp.lt.s32.totalorder %s316_s21, %s316_s21 }
  0x1f   :  { %258 = vmatprep.subr.mxu0 %v346_v0  ;;  %171 = vmatprep.subr.mxu1 %v51_v6  ;;  %v46_v15 = vld [vmem:[#allocation5 + $0x60] sm:$0xff]  ;;  %v55_v24 = vld [vmem:[#allocation5 + $0xb0] ss:$8 sm:$0x3] }
  0x20   :  { %259 = vmatpush3.msra.mxu0 %v42_v3  ;;  %172 = vmatpush1.msra.mxu1 %v50_v7  ;;  %v45_v16 = vld [vmem:[#allocation5 + $0xa0] ss:$0 sm:$0xff]  ;;  %v134_v25 = vrot.slane %v55_v24, %v133_v22  ;;  %v138_v26 = vrot.slane %v55_v24, %v137_v23  ;;  %p323_p13 = por %p322_p12, %p321_p11 }
  0x21   :  { %260 = vmatprep.subr.mxu0 %v346_v0  ;;  %173 = vmatprep.subr.mxu1 %v49_v9 }
  0x22   :  { %261 = vmatpush3.msra.mxu0 %v41_v8  ;;  %174 = vmatpush1.msra.mxu1 %v48_v13  ;;  %p324_p0 = pnand %p323_p13, %p317_p10 }
  0x23   :  { %262 = vmatprep.subr.mxu0 %v346_v0  ;;  %175 = vmatprep.subr.mxu1 %v47_v14 }
  0x24   :  { %263 = vmatpush3.msra.mxu0 %v40_v10  ;;  %176 = vmatpush1.msra.mxu1 %v46_v15 }
  0x25   :  { %264 = vmatprep.subr.mxu0 %v346_v0 }
  0x26   :  { %265 = vmatpush3.msra.mxu0 %v39_v11 }
  0x27   :  { %267 = vmatmul.mubr.msk.f32.vlgmr.msra.gmra.mxu0 %vm56_vm1, %v38_v12 }
  0xe7   :  { %v126_v17 = vpop.f32.mrf.mxu0 }
  0xe8   :  { %v127_v18 = vadd.f32 %v126_v17, %v45_v16 }
  0xe9   :  { %v268_v19 = vpop.f32.mrf.mxu0 }
  0xea   :  { %245 = vmatmul.mubr.msk.f32.vlgmr.msra.gmra.mxu1 %vm141_vm2, %v127_v18 }
 0x1aa   :  { %v211_v27 = vpop.f32.mrf.mxu1 }
 0x1ab   :  { %v212_v29 = vadd.f32 %v211_v27, %v134_v25 }
 0x1ac   :  { %v213_v28 = vpop.f32.mrf.mxu1 }
 0x1ad   :  { %v214_v30 = vadd.f32 %v213_v28, %v138_v26 }
 0x1af   :  { %v218_v31 = vcombine.low %v212_v29, %v214_v30 }
 0x1b1   :  { %246 = vst.sshfl [vmem:[#allocation7] sm:$0x33 pattern:$0x76325410] %v218_v31 }
 0x1b2   :  { %327 = shalt.err (!%p324_p0)
}
 0x1b3   :  { %237 = dma.vmem_to_hbm [thread:$0]  %s235_s1, 64, %s375_s2, [#allocation4]  }
 0x1b4   :  { %340 = dma.done.wait [#allocation4], 64  }
 0x1b5   :  { %341 = vsyncadd [#allocation4], 4294967232 }
 0x1b6   :  { %241 = vsyncpa [#allocation3], 1 }
 0x1b7   :  { %242 = vsyncpa [#allocation6], 1 }
 0x1b8   :  { %243 = vsyncpa [#allocation4], 1 }

</bundles_post_ra>
